<compile_context>
chip_gen: v6e
topology: v6e:2x2x1
jax: 0.10.0
libtpu: 0.0.40
codegen_flags: <defaults>
</compile_context>

<pallas_src>
import jax
import jax.numpy as jnp
from jax.experimental import pallas as pl
from jax.experimental.pallas import tpu as pltpu


# ---------------------------------------------------------------------------
# Kernels
# ---------------------------------------------------------------------------
def _q_head(x, w1_ref, b1_ref, w2_ref, b2_ref, wq_ref, bq_ref):
    """One critic MLP on a (tb, Ds+Da) activation tile -> lane-dense (1, tb) q row."""
    f32 = jnp.float32
    # fc1 + relu (MXU, f32 accumulation; dtype casts are no-ops for f32 weights,
    # and take the full-rate bf16 MXU path when the weights are bf16).
    h1 = jnp.dot(x.astype(w1_ref.dtype), w1_ref[...], preferred_element_type=f32)
    h1 = jnp.maximum(h1 + b1_ref[...].astype(f32), 0.0)
    # fc2 + relu.
    h2 = jnp.dot(h1.astype(w2_ref.dtype), w2_ref[...], preferred_element_type=f32)
    h2 = jnp.maximum(h2 + b2_ref[...].astype(f32), 0.0)
    # q head (out_features == 1): contract wq with h2 along fc2 using NT
    # ("B transposed") dimension numbers so the result lands as a lane-dense
    # (1, tb) row (batch on lanes) — no (tb, 1) masked-store column and no
    # materialized transpose.  The M=1 MXU pass is effectively free (MXU idle
    # after fc2).  Kept in f32 for accuracy.
    q = jax.lax.dot_general(wq_ref[...].astype(f32), h2,
                            (((1,), (1,)), ((), ())),
                            preferred_element_type=f32)          # (1, tb)
    return q + bq_ref[...].astype(f32)       # (1, 1) bias broadcasts over (1, tb)


def _critic_kernel(x_ref, w1_ref, b1_ref, w2_ref, b2_ref, wq_ref, bq_ref, q_ref):
    q_ref[0] = _q_head(x_ref[...], w1_ref, b1_ref, w2_ref, b2_ref, wq_ref, bq_ref)


def _critic_pair_kernel(x_ref,
                        w1a_ref, b1a_ref, w2a_ref, b2a_ref, wqa_ref, bqa_ref,
                        w1b_ref, b1b_ref, w2b_ref, b2b_ref, wqb_ref, bqb_ref,
                        q1_ref, q2_ref):
    # Twin SAC critics share one packed state/action tile DMA per grid step.
    x = x_ref[...]
    q1_ref[0] = _q_head(x, w1a_ref, b1a_ref, w2a_ref, b2a_ref, wqa_ref, bqa_ref)
    q2_ref[0] = _q_head(x, w1b_ref, b1b_ref, w2b_ref, b2b_ref, wqb_ref, bqb_ref)


# ---------------------------------------------------------------------------
# Wrappers
# ---------------------------------------------------------------------------
def _pick_batch_tile(batch, batch_tile):
    """Sublane-aligned batch tile; >= 2 grid steps whenever batch > 8 (v7x TCs)."""
    if batch <= 8:
        return batch                              # single tile == full array extent
    tile = max(8, (min(batch_tile, batch) // 8) * 8)
    half = -(-batch // 2)                         # ceil(batch / 2)
    two_way = -(-half // 8) * 8                   # rounded up to a multiple of 8
    return max(8, min(tile, two_way))


def _resident(shape):
    # Weight/bias block: same block index every grid step -> stays VMEM-resident.
    # TODO(synk): for larger fc dims, add pipeline_mode=pl.Buffered(1) (and move
    # bq to SMEM) to drop the redundant second buffer of each resident block.
    return pl.BlockSpec(shape, lambda i: (0,) * len(shape))


def _compiler_params():
    return pltpu.CompilerParams(
        # Batch tiles are independent -> shardable over v7x's two TensorCores.
        dimension_semantics=("parallel",),
        # v7x-safe budget (64 MiB physical per TC); plenty for tb<=8192 here.
        vmem_limit_bytes=48 * 1024 * 1024,
    )


def critic_forward(state, action, params, *, batch_tile=4096):
    """Q(s, a) — mirrors CriticNetwork.forward as one pallas_call."""
    w1, b1, w2, b2, wq, bq = params
    batch = state.shape[0]
    d_in = state.shape[1] + action.shape[1]
    fc1, fc2 = w1.shape[1], w2.shape[1]
    assert w1.shape[0] == d_in

    # torch.cat([state, action], dim=1) in the wrapper: one contiguous HBM pass,
    # so the kernel sees a single lane-padded activation stream.
    x = jnp.concatenate([state, action], axis=1)

    tb = _pick_batch_tile(batch, batch_tile)
    n_tiles = pl.cdiv(batch, tb)

    in_specs = [
        pl.BlockSpec((tb, d_in), lambda i: (i, 0)),   # packed [state | action]
        _resident((d_in, fc1)), _resident((1, fc1)),  # fc1
        _resident((fc1, fc2)), _resident((1, fc2)),   # fc2
        _resident((1, fc2)),   _resident((1, 1)),     # q head row + bias
    ]
    # Lane-dense q rows: (n_tiles, 1, tb); last two block dims == full extents.
    out_specs = pl.BlockSpec((1, 1, tb), lambda i: (i, 0, 0))

    flops = 2 * batch * (d_in * fc1 + fc1 * fc2 + fc2)
    param_bytes = sum(int(p.size) * p.dtype.itemsize for p in params)
    bytes_accessed = x.size * x.dtype.itemsize + param_bytes + n_tiles * tb * 4

    q_rows = pl.pallas_call(
        _critic_kernel,
        out_shape=jax.ShapeDtypeStruct((n_tiles, 1, tb), jnp.float32),
        grid=(n_tiles,),
        in_specs=in_specs,
        out_specs=out_specs,
        compiler_params=_compiler_params(),
        cost_estimate=pl.CostEstimate(
            flops=flops, transcendentals=0, bytes_accessed=bytes_accessed),
    )(x, w1, b1, w2, b2, wq, bq)

    # (n_tiles, 1, tb) -> (B, 1); rows past B in the last (partial) tile are junk.
    return q_rows.reshape(-1)[:batch].reshape(batch, 1)


def critic_pair_forward(state, action, params_1, params_2, *, batch_tile=4096):
    """Fused twin SAC critics: (Q1(s,a), Q2(s,a)) in one pallas_call that shares
    the packed state/action DMA and keeps both weight sets VMEM-resident."""
    w1a, b1a, w2a, b2a, wqa, bqa = params_1
    w1b, b1b, w2b, b2b, wqb, bqb = params_2
    batch = state.shape[0]
    d_in = state.shape[1] + action.shape[1]
    fc1, fc2 = w1a.shape[1], w2a.shape[1]
    assert w1a.shape[0] == d_in and w1b.shape == w1a.shape

    x = jnp.concatenate([state, action], axis=1)
    tb = _pick_batch_tile(batch, batch_tile)
    n_tiles = pl.cdiv(batch, tb)

    resident_set = [_resident((d_in, fc1)), _resident((1, fc1)),
                    _resident((fc1, fc2)), _resident((1, fc2)),
                    _resident((1, fc2)),   _resident((1, 1))]
    in_specs = [pl.BlockSpec((tb, d_in), lambda i: (i, 0))] + resident_set + [
        _resident((d_in, fc1)), _resident((1, fc1)),
        _resident((fc1, fc2)), _resident((1, fc2)),
        _resident((1, fc2)),   _resident((1, 1))]
    out_spec = pl.BlockSpec((1, 1, tb), lambda i: (i, 0, 0))

    flops = 2 * 2 * batch * (d_in * fc1 + fc1 * fc2 + fc2)
    param_bytes = sum(int(p.size) * p.dtype.itemsize
                      for p in (*params_1, *params_2))
    bytes_accessed = (x.size * x.dtype.itemsize + param_bytes
                      + 2 * n_tiles * tb * 4)

    q1_rows, q2_rows = pl.pallas_call(
        _critic_pair_kernel,
        out_shape=(jax.ShapeDtypeStruct((n_tiles, 1, tb), jnp.float32),
                   jax.ShapeDtypeStruct((n_tiles, 1, tb), jnp.float32)),
        grid=(n_tiles,),
        in_specs=in_specs,
        out_specs=(out_spec, out_spec),
        compiler_params=_compiler_params(),
        cost_estimate=pl.CostEstimate(
            flops=flops, transcendentals=0, bytes_accessed=bytes_accessed),
    )(x, w1a, b1a, w2a, b2a, wqa, bqa, w1b, b1b, w2b, b2b, wqb, bqb)

    q1 = q1_rows.reshape(-1)[:batch].reshape(batch, 1)
    q2 = q2_rows.reshape(-1)[:batch].reshape(batch, 1)
    return q1, q2


# ---------------------------------------------------------------------------
# Parameter init (nn.Linear default: uniform +-1/sqrt(fan_in)) and reference
# ---------------------------------------------------------------------------
def init_critic_params(key, input_dims, n_actions, fc1_dims=256, fc2_dims=256,
                       dtype=jnp.float32):
    """Weights stored transposed (in_features, out_features); fc1 takes the
    packed [state|action] input; the q-head weight is a (1, fc2) row.  Pass
    dtype=jnp.bfloat16 on v6e/v7x for 2x MXU rate and half the resident weight
    VMEM (accumulation stays f32)."""
    def linear(k, fan_in, fan_out):
        kw, kb = jax.random.split(k)
        bound = 1.0 / (fan_in ** 0.5)
        w = jax.random.uniform(kw, (fan_in, fan_out), jnp.float32, -bound, bound)
        b = jax.random.uniform(kb, (1, fan_out), jnp.float32, -bound, bound)
        return w.astype(dtype), b.astype(dtype)

    k1, k2, k3 = jax.random.split(key, 3)
    d_in = input_dims[0] + n_actions
    w1, b1 = linear(k1, d_in, fc1_dims)
    w2, b2 = linear(k2, fc1_dims, fc2_dims)
    wq_col, bq = linear(k3, fc2_dims, 1)        # (fc2, 1), (1, 1)
    wq = wq_col.T                               # (1, fc2) row for the q head
    return (w1, b1, w2, b2, wq, bq)


def critic_reference(state, action, params, act_dtype=jnp.float32):
    """Pure-JAX reference (HIGHEST matmul precision, f32 accumulation)."""
    w1, b1, w2, b2, wq, bq = params
    f32, hp = jnp.float32, jax.lax.Precision.HIGHEST
    x = jnp.concatenate([state, action], axis=1)
    h1 = jnp.maximum(jnp.dot(x.astype(act_dtype), w1, precision=hp,
                             preferred_element_type=f32) + b1.astype(f32), 0.0)
    h2 = jnp.maximum(jnp.dot(h1.astype(act_dtype), w2, precision=hp,
                             preferred_element_type=f32) + b2.astype(f32), 0.0)
    return (jnp.dot(h2, wq.astype(f32).T, precision=hp,
                    preferred_element_type=f32) + bq.astype(f32))


# ---------------------------------------------------------------------------
# Demo / checks
# ---------------------------------------------------------------------------
if __name__ == "__main__":
    input_dims = (8,)
    n_actions = 4
    fc1_dims, fc2_dims = 32, 32

    key = jax.random.PRNGKey(0)
    kp, kp2, ks, ka = jax.random.split(key, 4)
    params = init_critic_params(kp, input_dims, n_actions, fc1_dims, fc2_dims)

    # Case 1: tiny batch -> single grid step, blocks == full array extents.
    state = jax.random.normal(ks, (2, input_dims[0]), jnp.float32)
    action = jax.random.normal(ka, (2, n_actions), jnp.float32)
    q = critic_forward(state, action, params)
    jax.block_until_ready(q)
    assert q.shape == (2, 1)
    assert jnp.allclose(q, critic_reference(state, action, params),
                        rtol=1e-3, atol=1e-3), "mismatch (case 1)"

    # Case 2: gridded batch with a PARTIAL last tile (41 rows, tb=8) -> checks
    # that junk rows of the padded last tile never leak into the (B, 1) result.
    ks2, ka2 = jax.random.split(jax.random.PRNGKey(1))
    state2 = jax.random.normal(ks2, (41, input_dims[0]), jnp.float32)
    action2 = jax.random.normal(ka2, (41, n_actions), jnp.float32)
    q2 = critic_forward(state2, action2, params, batch_tile=8)
    jax.block_until_ready(q2)
    assert q2.shape == (41, 1)
    assert jnp.allclose(q2, critic_reference(state2, action2, params),
                        rtol=1e-3, atol=1e-3), "mismatch (case 2)"

    # Case 3: fused twin critics (SAC Q1/Q2): one launch, shared s/a DMA,
    # >= 2 grid steps so both v7x TensorCores get work.
    params_b = init_critic_params(kp2, input_dims, n_actions, fc1_dims, fc2_dims)
    ks3, ka3 = jax.random.split(jax.random.PRNGKey(2))
    state3 = jax.random.normal(ks3, (16, input_dims[0]), jnp.float32)
    action3 = jax.random.normal(ka3, (16, n_actions), jnp.float32)
    q1, q2b = critic_pair_forward(state3, action3, params, params_b)
    jax.block_until_ready((q1, q2b))
    assert q1.shape == (16, 1) and q2b.shape == (16, 1)
    assert jnp.allclose(q1, critic_reference(state3, action3, params),
                        rtol=1e-3, atol=1e-3), "mismatch (case 3, q1)"
    assert jnp.allclose(q2b, critic_reference(state3, action3, params_b),
                        rtol=1e-3, atol=1e-3), "mismatch (case 3, q2)"

    # Case 4: bf16 weights (f32 accumulation) -- looser tolerance by design.
    params_bf16 = init_critic_params(kp, input_dims, n_actions, fc1_dims,
                                     fc2_dims, dtype=jnp.bfloat16)
    q4 = critic_forward(state3, action3, params_bf16)
    jax.block_until_ready(q4)
    ref4 = critic_reference(state3, action3, params_bf16, act_dtype=jnp.bfloat16)
    assert jnp.allclose(q4, ref4, rtol=5e-2, atol=5e-2), "mismatch (case 4, bf16)"

    print("KERNEL_OK")
</pallas_src>

<mosaic_0001>
module attributes {stable_mosaic.version = 11 : i64} {
  func.func @_critic_kernel(%arg0: i32, %arg1: memref<2x12xf32, #tpu.memory_space<vmem>>, %arg2: memref<12x32xf32, #tpu.memory_space<vmem>>, %arg3: memref<1x32xf32, #tpu.memory_space<vmem>>, %arg4: memref<32x32xf32, #tpu.memory_space<vmem>>, %arg5: memref<1x32xf32, #tpu.memory_space<vmem>>, %arg6: memref<1x32xf32, #tpu.memory_space<vmem>>, %arg7: memref<1x1xf32, #tpu.memory_space<vmem>>, %arg8: memref<1x1x2xf32, #tpu.memory_space<vmem>>) attributes {dimension_semantics = [#tpu.dimension_semantics<parallel>], iteration_bounds = array<i64: 1>, scalar_prefetch = 0 : i64, scratch_operands = 0 : i64, tpu.core_type = #tpu.core_type<tc>, window_params = [{transform_indices = @transform_0, window_bounds = array<i64: 2, 12>}, {pipeline_mode = #tpu.pipeline_mode<synchronous>, transform_indices = @transform_1, window_bounds = array<i64: 12, 32>}, {pipeline_mode = #tpu.pipeline_mode<synchronous>, transform_indices = @transform_2, window_bounds = array<i64: 1, 32>}, {pipeline_mode = #tpu.pipeline_mode<synchronous>, transform_indices = @transform_3, window_bounds = array<i64: 32, 32>}, {pipeline_mode = #tpu.pipeline_mode<synchronous>, transform_indices = @transform_4, window_bounds = array<i64: 1, 32>}, {pipeline_mode = #tpu.pipeline_mode<synchronous>, transform_indices = @transform_5, window_bounds = array<i64: 1, 32>}, {pipeline_mode = #tpu.pipeline_mode<synchronous>, transform_indices = @transform_6, window_bounds = array<i64: 1, 1>}, {transform_indices = @transform_7, window_bounds = array<i64: 1, 1, 2>}]} {
    %c0 = arith.constant 0 : index
    %c0_0 = arith.constant 0 : index
    %0 = vector.load %arg1[%c0, %c0_0] : memref<2x12xf32, #tpu.memory_space<vmem>>, vector<2x12xf32>
    %c0_1 = arith.constant 0 : index
    %c0_2 = arith.constant 0 : index
    %1 = vector.load %arg2[%c0_1, %c0_2] : memref<12x32xf32, #tpu.memory_space<vmem>>, vector<12x32xf32>
    %cst = arith.constant dense<0.000000e+00> : vector<2x32xf32>
    %2 = tpu.matmul %0, %1, %cst {dimension_numbers = #tpu.dot_dimension_numbers<[1], [0], [0], [1], [0, 0, 1, 1], [], []>} : vector<2x12xf32>, vector<12x32xf32>, vector<2x32xf32> -> vector<2x32xf32>
    %c0_3 = arith.constant 0 : index
    %c0_4 = arith.constant 0 : index
    %3 = vector.load %arg3[%c0_3, %c0_4] : memref<1x32xf32, #tpu.memory_space<vmem>>, vector<1x32xf32>
    %4 = vector.broadcast %3 : vector<1x32xf32> to vector<2x32xf32>
    %5 = arith.addf %2, %4 : vector<2x32xf32>
    %cst_5 = arith.constant 0.000000e+00 : f32
    %6 = vector.broadcast %cst_5 : f32 to vector<2x32xf32>
    %7 = arith.maximumf %5, %6 : vector<2x32xf32>
    %c0_6 = arith.constant 0 : index
    %c0_7 = arith.constant 0 : index
    %8 = vector.load %arg4[%c0_6, %c0_7] : memref<32x32xf32, #tpu.memory_space<vmem>>, vector<32x32xf32>
    %cst_8 = arith.constant dense<0.000000e+00> : vector<2x32xf32>
    %9 = tpu.matmul %7, %8, %cst_8 {dimension_numbers = #tpu.dot_dimension_numbers<[1], [0], [0], [1], [0, 0, 1, 1], [], []>} : vector<2x32xf32>, vector<32x32xf32>, vector<2x32xf32> -> vector<2x32xf32>
    %c0_9 = arith.constant 0 : index
    %c0_10 = arith.constant 0 : index
    %10 = vector.load %arg5[%c0_9, %c0_10] : memref<1x32xf32, #tpu.memory_space<vmem>>, vector<1x32xf32>
    %11 = vector.broadcast %10 : vector<1x32xf32> to vector<2x32xf32>
    %12 = arith.addf %9, %11 : vector<2x32xf32>
    %cst_11 = arith.constant 0.000000e+00 : f32
    %13 = vector.broadcast %cst_11 : f32 to vector<2x32xf32>
    %14 = arith.maximumf %12, %13 : vector<2x32xf32>
    %c0_12 = arith.constant 0 : index
    %c0_13 = arith.constant 0 : index
    %15 = vector.load %arg6[%c0_12, %c0_13] : memref<1x32xf32, #tpu.memory_space<vmem>>, vector<1x32xf32>
    %cst_14 = arith.constant dense<0.000000e+00> : vector<1x2xf32>
    %16 = tpu.matmul %15, %14, %cst_14 {dimension_numbers = #tpu.dot_dimension_numbers<[1], [1], [0], [0], [0, 0, 1, 0], [], []>} : vector<1x32xf32>, vector<2x32xf32>, vector<1x2xf32> -> vector<1x2xf32>
    %c0_15 = arith.constant 0 : index
    %c0_16 = arith.constant 0 : index
    %17 = vector.load %arg7[%c0_15, %c0_16] : memref<1x1xf32, #tpu.memory_space<vmem>>, vector<1x1xf32>
    %18 = vector.broadcast %17 : vector<1x1xf32> to vector<1x2xf32>
    %19 = arith.addf %16, %18 : vector<1x2xf32>
    %c0_17 = arith.constant 0 : index
    %c0_18 = arith.constant 0 : index
    %c0_19 = arith.constant 0 : index
    %20 = vector.load %arg8[%c0_17, %c0_18, %c0_19] : memref<1x1x2xf32, #tpu.memory_space<vmem>>, vector<1x1x2xf32>
    %21 = vector.shape_cast %20 : vector<1x1x2xf32> to vector<1x2xf32>
    %22 = vector.shape_cast %19 : vector<1x2xf32> to vector<1x1x2xf32>
    tpu.vector_store %arg8[%c0_17, %c0_18, %c0_19], %22 {strides = array<i32>} : memref<1x1x2xf32, #tpu.memory_space<vmem>>, vector<1x1x2xf32>,
    return
  }
  func.func @transform_0(%arg0: i32) -> (i32, i32) {
    %c0_i32 = arith.constant 0 : i32
    %c0_i32_0 = arith.constant 0 : i32
    return %arg0, %c0_i32 : i32, i32
  }
  func.func @transform_1(%arg0: i32) -> (i32, i32) {
    %c0_i32 = arith.constant 0 : i32
    %c0_i32_0 = arith.constant 0 : i32
    %c0_i32_1 = arith.constant 0 : i32
    return %c0_i32, %c0_i32_0 : i32, i32
  }
  func.func @transform_2(%arg0: i32) -> (i32, i32) {
    %c0_i32 = arith.constant 0 : i32
    %c0_i32_0 = arith.constant 0 : i32
    %c0_i32_1 = arith.constant 0 : i32
    return %c0_i32, %c0_i32_0 : i32, i32
  }
  func.func @transform_3(%arg0: i32) -> (i32, i32) {
    %c0_i32 = arith.constant 0 : i32
    %c0_i32_0 = arith.constant 0 : i32
    %c0_i32_1 = arith.constant 0 : i32
    return %c0_i32, %c0_i32_0 : i32, i32
  }
  func.func @transform_4(%arg0: i32) -> (i32, i32) {
    %c0_i32 = arith.constant 0 : i32
    %c0_i32_0 = arith.constant 0 : i32
    %c0_i32_1 = arith.constant 0 : i32
    return %c0_i32, %c0_i32_0 : i32, i32
  }
  func.func @transform_5(%arg0: i32) -> (i32, i32) {
    %c0_i32 = arith.constant 0 : i32
    %c0_i32_0 = arith.constant 0 : i32
    %c0_i32_1 = arith.constant 0 : i32
    return %c0_i32, %c0_i32_0 : i32, i32
  }
  func.func @transform_6(%arg0: i32) -> (i32, i32) {
    %c0_i32 = arith.constant 0 : i32
    %c0_i32_0 = arith.constant 0 : i32
    %c0_i32_1 = arith.constant 0 : i32
    return %c0_i32, %c0_i32_0 : i32, i32
  }
  func.func @transform_7(%arg0: i32) -> (i32, i32, i32) {
    %c0_i32 = arith.constant 0 : i32
    %c0_i32_0 = arith.constant 0 : i32
    %c0_i32_1 = arith.constant 0 : i32
    return %arg0, %c0_i32, %c0_i32_0 : i32, i32, i32
  }
}

</mosaic_0001>

<bundles_post_ra>
// kernel: tpu_custom_call.1
= control target key start
LH: loop header
LB: loop body
LE: loop exit
PB: predicated region body
PF: predicated region fallthrough
CT: control target
= control target key end

     0   :  { %s527_s0 = inlined_call_operand.vmem [shape: f32[2,12], index: 0, kind: input, shape index: {}]   ;;  %s528_s1 = inlined_call_operand.hbm [shape: f32[12,32], index: 1, kind: input, shape index: {}]   ;;  %s529_s2 = inlined_call_operand.vmem [shape: f32[1,32], index: 2, kind: input, shape index: {}]   ;;  %s530_s3 = inlined_call_operand.hbm [shape: f32[32,32], index: 3, kind: input, shape index: {}]   ;;  %s531_s4 = inlined_call_operand.vmem [shape: f32[1,32], index: 4, kind: input, shape index: {}]   ;;  %s532_s5 = inlined_call_operand.vmem [shape: f32[1,32], index: 5, kind: input, shape index: {}]   ;;  %s533_s6 = inlined_call_operand.<no memory space> [shape: f32[1,1], index: 6, kind: input, shape index: {}]   ;;  %s534_s7 = inlined_call_operand.hbm [shape: f32[1,1,2], index: 7, kind: output, shape index: {}]  }
   0x1   :  { %v12_v0 = vstv %s533_s6 }
   0x2   :  { %13 = vst [vmem:[#allocation2] sm:$0x1] %v12_v0 }
   0x3   :  { %14 = vsyncpa [#allocation4], 0 }
   0x4   :  { %15 = vsyncpa [#allocation7], 0 }
   0x5   :  { %16 = vsyncpa [#allocation5], 0  ;;  %s452_s26 = smov [#allocation3]  }
   0x6   :  { %s24_s27 = sshll.u32 %s452_s26, 4  ;;  %s25_s27 = int_to_ptr.vmem [resolvable:$true] %s24_s27 }
   0x7   :  { %s394_s28 = scalar_lea.vmem %s25_s27, 256  ;;  %p399_p1 = scmp.lt.s32.totalorder %s25_s27, %s25_s27 }
   0x8   :  { %p395_p0 = scmp.ne.s32.totalorder %s25_s27, %s394_s28  ;;  %p400_p2 = scmp.lt.s32.totalorder %s394_s28, %s394_s28 }
   0xa   :  { %p401_p3 = por %p400_p2, %p399_p1 }
   0xc   :  { %p402_p4 = pnand %p401_p3, %p395_p0 }
   0xe   :  { %405 = shalt.err (!%p402_p4)
}
   0xf   :  { %s453_s29 = smov 128   ;;  %s454_s30 = smov 8  }
  0x10   :  { %30 = dma.hbm_to_vmem [thread:$0]  %s528_s1, 256, %s25_s27, [#allocation4], %s453_s29, %s453_s29, %s454_s30  }
  0x11   :  { %s455_s6 = smov [#allocation6]  }
  0x12   :  { %s38_s10 = sshll.u32 %s455_s6, 4  ;;  %s39_s10 = int_to_ptr.vmem [resolvable:$true] %s38_s10 }
  0x13   :  { %s414_s11 = scalar_lea.vmem %s39_s10, 512  ;;  %p419_p6 = scmp.lt.s32.totalorder %s39_s10, %s39_s10 }
  0x14   :  { %p415_p5 = scmp.ne.s32.totalorder %s39_s10, %s414_s11  ;;  %p420_p7 = scmp.lt.s32.totalorder %s414_s11, %s414_s11 }
  0x16   :  { %p421_p8 = por %p420_p7, %p419_p6 }
  0x18   :  { %p422_p9 = pnand %p421_p8, %p415_p5 }
  0x1a   :  { %425 = shalt.err (!%p422_p9)
}
  0x1b   :  { %44 = dma.hbm_to_vmem [thread:$0]  %s530_s3, 512, %s39_s10, [#allocation7], %s453_s29, %s453_s29, %s454_s30  }
  0x1c   :  { %446 = dma.done.wait [#allocation4], 256  }
  0x1d   :  { %447 = vsyncadd [#allocation4], 4294967040 }
  0x1e   :  { %448 = dma.done.wait [#allocation7], 512  }
  0x1f   :  { %449 = vsyncadd [#allocation7], 4294966784  ;;  %v456_v1 = vmov 0.0   ;;  %vm457_vm0 = vmmov 0   ;;  %vm71_vm1 = vcmask 1043456   ;;  %v58_v3 = vld [vmem:[#allocation3] sm:$0xff]  ;;  %v239_v22 = vlaneseq }
  0x20   :  { %354 = vmatprep.subr.mxu0 %v456_v1  ;;  %358 = vmatprep.mubr.msk.f32.mxu0 %vm457_vm0, %v456_v1  ;;  %v59_v2 = vld [vmem:[#allocation3 + $0x8] sm:$0xf]  ;;  %v57_v4 = vld [vmem:[%s527_s0] sm:$0x3]  ;;  %vm67_vm2 = vcmask 97280   ;;  %v146_v8 = vld [vmem:[#allocation6] sm:$0xff] }
  0x21   :  { %361 = vmatprep.subr.mxu1 %v456_v1  ;;  %369 = vmatprep.mubr.msk.f32.mxu1 %vm457_vm0, %v456_v1  ;;  %v149_v5 = vld [vmem:[#allocation6 + $0x18] sm:$0xff]  ;;  %v148_v6 = vld [vmem:[#allocation6 + $0x10] sm:$0xff]  ;;  %v147_v7 = vld [vmem:[#allocation6 + $0x8] sm:$0xff]  ;;  %vm157_vm3 = vcmask 261120   ;;  %v458_v15 = vmov 0   ;;  %v240_v23 = vshrl.u32 %v239_v22, 7 }
  0x22   :  { %355 = vmatpush3.msk.msra.mxu0 %vm71_vm1, %v59_v2  ;;  %362 = vmatpush3.msra.mxu1 %v149_v5  ;;  %v337_v9 = vld [vmem:[%s529_s2] ss:$0 sm:$0xff]  ;;  %s459_s18 = smov [#allocation8]   ;;  %vm319_vm4 = vcmask 8192  }
  0x23   :  { %356 = vmatprep.subr.mxu0 %v456_v1  ;;  %363 = vmatprep.subr.mxu1 %v456_v1  ;;  %v233_v14 = vld [vmem:[#allocation2] sm:$0x1]  ;;  %v241_v24 = vsub.s32 0, %v240_v23  ;;  %s327_s19 = sshll.u32 %s459_s18, 4  ;;  %s328_s19 = int_to_ptr.vmem [resolvable:$true] %s327_s19 }
  0x24   :  { %357 = vmatpush3.msra.mxu0 %v58_v3  ;;  %364 = vmatpush3.msra.mxu1 %v148_v6  ;;  %v340_v16 = vld [vmem:[%s531_s4] ss:$0 sm:$0xff]  ;;  %s426_s4 = scalar_lea.vmem %s328_s19, 16  ;;  %s430_s20 = scalar_lea.vmem %s328_s19, 32 }
  0x25   :  { %359 = vmatmul.mubr.msk.f32.vlgmr.msra.gmra.mxu0 %vm67_vm2, %v57_v4  ;;  %372 = vmatprep.subr.mxu0 %v456_v1  ;;  %v232_v21 = vld [vmem:[%s532_s5] sm:$0x1]  ;;  %p427_p10 = scmp.ne.s32.totalorder %s328_s19, %s426_s4  ;;  %p431_p11 = scmp.lt.s32.totalorder %s328_s19, %s328_s19 }
  0x26   :  { %374 = vmatprep.mubr.msk.f32.mxu0 %vm457_vm0, %v456_v1  ;;  %365 = vmatprep.subr.mxu1 %v456_v1  ;;  %p432_p12 = scmp.lt.s32.totalorder %s430_s20, %s426_s4 }
  0x27   :  { %366 = vmatpush3.msra.mxu1 %v147_v7  ;;  %385 = vset.pattern.permute.xlu0 %v458_v15 }
  0x28   :  { %367 = vmatprep.subr.mxu1 %v456_v1  ;;  %236 = vperm.xlu0 %385, %v233_v14   ;;  %p433_p13 = por %p432_p12, %p431_p11 }
  0x29   :  { %368 = vmatpush3.msra.mxu1 %v146_v8 }
  0x2a   :  { %p434_p0 = pnand %p433_p13, %p427_p10 }
  0xa3   :  { %v237_v25 = vpop.permute.xlu0 %236 }
  0xa4   :  { %v242_v26 = vrot.slane %v237_v25, %v241_v24 }
  0xe5   :  { %v141_v10 = vpop.f32.mrf.mxu0 }
  0xe6   :  { %v142_v11 = vadd.f32 %v337_v9, %v141_v10 }
  0xe7   :  { %v360_v12 = vpop.f32.mrf.mxu0 }
  0xe8   :  { %v145_v13 = vmax.f32 %v142_v11, 0.0 }
  0xea   :  { %370 = vmatmul.mubr.msk.f32.vlgmr.msra.gmra.mxu1 %vm157_vm3, %v145_v13 }
 0x1aa   :  { %v227_v17 = vpop.f32.mrf.mxu1 }
 0x1ab   :  { %v228_v18 = vadd.f32 %v340_v16, %v227_v17 }
 0x1ac   :  { %v371_v19 = vpop.f32.mrf.mxu1 }
 0x1ad   :  { %v231_v20 = vmax.f32 %v228_v18, 0.0 }
 0x1af   :  { %373 = vmatpush3.xpose.msk.msra.mxu0 %vm157_vm3, %v231_v20 }
 0x1b2   :  { %375 = vmatmul.mubr.msk.f32.vlgmr.msra.gmra.mxu0 %vm157_vm3, %v232_v21 }
 0x272   :  { %v315_v27 = vpop.f32.mrf.mxu0 }
 0x273   :  { %v316_v28 = vadd.f32 %v315_v27, %v242_v26 }
 0x274   :  { %v376_v29 = vpop.f32.mrf.mxu0 }
 0x275   :  { %320 = vst.msk [vmem:[#allocation8] sm:$0x1] %vm319_vm4, %v316_v28 }
 0x276   :  { %437 = shalt.err (!%p434_p0)
}
 0x277   :  { %330 = dma.vmem_to_hbm [thread:$0]  %s328_s19, 16, %s534_s7, [#allocation5]  }
 0x278   :  { %450 = dma.done.wait [#allocation5], 16  }
 0x279   :  { %451 = vsyncadd [#allocation5], 4294967280 }
 0x27a   :  { %334 = vsyncpa [#allocation4], 1 }
 0x27b   :  { %335 = vsyncpa [#allocation7], 1 }
 0x27c   :  { %336 = vsyncpa [#allocation5], 1 }

</bundles_post_ra>
